<compile_context>
chip_gen: v6e
topology: v6e:2x2x1
jax: 0.10.0
libtpu: 0.0.40
codegen_flags: <defaults>
</compile_context>

<pallas_src>
import functools

import jax
import jax.numpy as jnp
from jax.experimental import pallas as pl
from jax.experimental.pallas import tpu as pltpu  # noqa: F401  (TPU tuning hooks for the tiled path)

LANE = 128  # vreg lane width -> pad feature dims to this for lane-dense loads/stores


def _pad2d(x, rows, cols):
    r, c = x.shape
    return jnp.pad(x, ((0, rows - r), (0, cols - c)))


# ---------------------------------------------------------------------------
# Fused Pallas kernel: whole multi-layer GCN forward in one call.
#   refs = (a_ref, h0_ref, w0_ref, b0_ref, ..., w{L-1}_ref, b{L-1}_ref, o_ref)
#   a_ref, h0_ref, w*_ref : bf16 ; b*_ref : f32 ; o_ref : f32
# ---------------------------------------------------------------------------
def gcn_fused_kernel(*refs, n_layers):
    a_ref = refs[0]
    h_ref = refs[1]
    o_ref = refs[2 + 2 * n_layers]

    a = a_ref[...]          # [N, N]   bf16 normalized adjacency, resident across all layers
    h = h_ref[...]          # [N, 128] bf16 padded node features
    h_f32 = None
    for l in range(n_layers):
        w = refs[2 + 2 * l][...]   # [128, 128] bf16 zero-padded weight
        b = refs[3 + 2 * l][...]   # [1, 128]   f32  zero-padded bias
        # (A @ H) @ W : bf16 MXU inputs, f32 accumulation on both passes.
        ah = jnp.dot(a, h, preferred_element_type=jnp.float32)
        hw = jnp.dot(ah.astype(jnp.bfloat16), w, preferred_element_type=jnp.float32)
        # every GCNLayer in the reference is built with `activation` -> ReLU each layer;
        # bias + ReLU stay f32 on the accumulator (v5e VPU has no bf16).
        h_f32 = jnp.maximum(hw + b, 0.0)
        h = h_f32.astype(jnp.bfloat16)
    o_ref[...] = h_f32.astype(o_ref.dtype)


@jax.jit
def gcn_forward(a_norm, features, params):
    """Eval-mode forward (dropout == identity). One pallas_call for all layers.

    Jitted so the zero-pads, bf16 casts and the final column slice fuse around the
    pallas_call instead of materializing as separate HBM-touching XLA ops.
    """
    n = a_norm.shape[0]
    f_pad = LANE
    n_layers = len(params)

    h0 = _pad2d(features, n, f_pad).astype(jnp.bfloat16)
    flat_wb = []
    for (w, b) in params:
        flat_wb.append(_pad2d(w, f_pad, f_pad).astype(jnp.bfloat16))
        flat_wb.append(_pad2d(b.astype(jnp.float32), 1, f_pad))

    kernel = functools.partial(gcn_fused_kernel, n_layers=n_layers)
    out_pad = pl.pallas_call(
        kernel,
        out_shape=jax.ShapeDtypeStruct((n, f_pad), jnp.float32),
        # no grid / no in_specs: full-array VMEM blocks, single invocation
    )(a_norm.astype(jnp.bfloat16), h0, *flat_wb)

    f_out_final = params[-1][0].shape[1]
    # keep the output 128-lane-dense inside the kernel (unmasked vst); slice outside.
    return out_pad[:, :f_out_final]


# ---------------------------------------------------------------------------
# Parameter init + graph construction (deterministic, in-script).
# ---------------------------------------------------------------------------
def init_gcn_params(key, in_feats, n_hidden, n_classes, n_layers):
    """Glorot-uniform weights, zero bias."""
    if n_layers < 2:
        dims = [(in_feats, n_classes)]
    else:
        dims = [(in_feats, n_hidden)]
        dims += [(n_hidden, n_hidden)] * (n_layers - 2)
        dims += [(n_hidden, n_classes)]
    params = []
    for (fi, fo) in dims:
        key, wk = jax.random.split(key)
        limit = (6.0 / (fi + fo)) ** 0.5
        w = jax.random.uniform(wk, (fi, fo), jnp.float32, -limit, limit)
        b = jnp.zeros((1, fo), jnp.float32)
        params.append((w, b))
    return params


def build_normalized_adjacency(key, n_nodes):
    """Random symmetric graph, A_hat = D^{-1/2} (A + I) D^{-1/2}."""
    bern = jax.random.bernoulli(key, p=0.2, shape=(n_nodes, n_nodes))
    a = jnp.triu(bern.astype(jnp.float32), k=1)
    a = a + a.T + jnp.eye(n_nodes, dtype=jnp.float32)  # add self-loops
    deg = jnp.sum(a, axis=1)
    d_inv_sqrt = 1.0 / jnp.sqrt(deg)
    return a * d_inv_sqrt[:, None] * d_inv_sqrt[None, :]


if __name__ == "__main__":
    key = jax.random.PRNGKey(0)
    k_feat, k_adj, k_param = jax.random.split(key, 3)

    # Small shapes consistent with the module's forward.
    n_nodes = 32
    in_feats = 16
    n_hidden = 32
    n_classes = 8
    n_layers = 3

    features = jax.random.normal(k_feat, (n_nodes, in_feats), jnp.float32)
    a_norm = build_normalized_adjacency(k_adj, n_nodes)
    params = init_gcn_params(k_param, in_feats, n_hidden, n_classes, n_layers)

    out = gcn_forward(a_norm, features, params)
    out = jax.block_until_ready(out)

    assert out.shape == (n_nodes, n_classes), out.shape
    assert out.dtype == jnp.float32

    # quick sanity check against a pure-JAX f32 reference
    # (tolerance loosened vs the all-f32 kernel: MXU inputs are bf16, accumulation is f32)
    h_ref = features
    for (w, b) in params:
        h_ref = jnp.maximum(a_norm @ (h_ref @ w) + b, 0.0)
    assert jnp.allclose(out, h_ref, atol=3e-2, rtol=3e-2), (
        float(jnp.max(jnp.abs(out - h_ref))))

    print("KERNEL_OK")
</pallas_src>

<mosaic_0001>
module attributes {stable_mosaic.version = 11 : i64} {
  func.func @gcn_fused_kernel(%arg0: memref<32x32xbf16, #tpu.memory_space<vmem>>, %arg1: memref<32x128xbf16, #tpu.memory_space<vmem>>, %arg2: memref<128x128xbf16, #tpu.memory_space<vmem>>, %arg3: memref<1x128xf32, #tpu.memory_space<vmem>>, %arg4: memref<128x128xbf16, #tpu.memory_space<vmem>>, %arg5: memref<1x128xf32, #tpu.memory_space<vmem>>, %arg6: memref<128x128xbf16, #tpu.memory_space<vmem>>, %arg7: memref<1x128xf32, #tpu.memory_space<vmem>>, %arg8: memref<32x128xf32, #tpu.memory_space<vmem>>) attributes {dimension_semantics = [], scalar_prefetch = 0 : i64, scratch_operands = 0 : i64, tpu.core_type = #tpu.core_type<tc>} {
    %c0 = arith.constant 0 : index
    %c0_0 = arith.constant 0 : index
    %0 = vector.load %arg0[%c0, %c0_0] : memref<32x32xbf16, #tpu.memory_space<vmem>>, vector<32x32xbf16>
    %c0_1 = arith.constant 0 : index
    %c0_2 = arith.constant 0 : index
    %1 = vector.load %arg1[%c0_1, %c0_2] : memref<32x128xbf16, #tpu.memory_space<vmem>>, vector<32x128xbf16>
    %c0_3 = arith.constant 0 : index
    %c0_4 = arith.constant 0 : index
    %2 = vector.load %arg2[%c0_3, %c0_4] : memref<128x128xbf16, #tpu.memory_space<vmem>>, vector<128x128xbf16>
    %c0_5 = arith.constant 0 : index
    %c0_6 = arith.constant 0 : index
    %3 = vector.load %arg3[%c0_5, %c0_6] : memref<1x128xf32, #tpu.memory_space<vmem>>, vector<1x128xf32>
    %cst = arith.constant dense<0.000000e+00> : vector<32x128xf32>
    %4 = tpu.matmul %0, %1, %cst {dimension_numbers = #tpu.dot_dimension_numbers<[1], [0], [0], [1], [0, 0, 1, 1], [], []>} : vector<32x32xbf16>, vector<32x128xbf16>, vector<32x128xf32> -> vector<32x128xf32>
    %5 = arith.truncf %4 : vector<32x128xf32> to vector<32x128xbf16>
    %cst_7 = arith.constant dense<0.000000e+00> : vector<32x128xf32>
    %6 = tpu.matmul %5, %2, %cst_7 {dimension_numbers = #tpu.dot_dimension_numbers<[1], [0], [0], [1], [0, 0, 1, 1], [], []>} : vector<32x128xbf16>, vector<128x128xbf16>, vector<32x128xf32> -> vector<32x128xf32>
    %7 = vector.broadcast %3 : vector<1x128xf32> to vector<32x128xf32>
    %8 = arith.addf %6, %7 : vector<32x128xf32>
    %cst_8 = arith.constant 0.000000e+00 : f32
    %9 = vector.broadcast %cst_8 : f32 to vector<32x128xf32>
    %10 = arith.maximumf %8, %9 : vector<32x128xf32>
    %11 = arith.truncf %10 : vector<32x128xf32> to vector<32x128xbf16>
    %c0_9 = arith.constant 0 : index
    %c0_10 = arith.constant 0 : index
    %12 = vector.load %arg4[%c0_9, %c0_10] : memref<128x128xbf16, #tpu.memory_space<vmem>>, vector<128x128xbf16>
    %c0_11 = arith.constant 0 : index
    %c0_12 = arith.constant 0 : index
    %13 = vector.load %arg5[%c0_11, %c0_12] : memref<1x128xf32, #tpu.memory_space<vmem>>, vector<1x128xf32>
    %cst_13 = arith.constant dense<0.000000e+00> : vector<32x128xf32>
    %14 = tpu.matmul %0, %11, %cst_13 {dimension_numbers = #tpu.dot_dimension_numbers<[1], [0], [0], [1], [0, 0, 1, 1], [], []>} : vector<32x32xbf16>, vector<32x128xbf16>, vector<32x128xf32> -> vector<32x128xf32>
    %15 = arith.truncf %14 : vector<32x128xf32> to vector<32x128xbf16>
    %cst_14 = arith.constant dense<0.000000e+00> : vector<32x128xf32>
    %16 = tpu.matmul %15, %12, %cst_14 {dimension_numbers = #tpu.dot_dimension_numbers<[1], [0], [0], [1], [0, 0, 1, 1], [], []>} : vector<32x128xbf16>, vector<128x128xbf16>, vector<32x128xf32> -> vector<32x128xf32>
    %17 = vector.broadcast %13 : vector<1x128xf32> to vector<32x128xf32>
    %18 = arith.addf %16, %17 : vector<32x128xf32>
    %cst_15 = arith.constant 0.000000e+00 : f32
    %19 = vector.broadcast %cst_15 : f32 to vector<32x128xf32>
    %20 = arith.maximumf %18, %19 : vector<32x128xf32>
    %21 = arith.truncf %20 : vector<32x128xf32> to vector<32x128xbf16>
    %c0_16 = arith.constant 0 : index
    %c0_17 = arith.constant 0 : index
    %22 = vector.load %arg6[%c0_16, %c0_17] : memref<128x128xbf16, #tpu.memory_space<vmem>>, vector<128x128xbf16>
    %c0_18 = arith.constant 0 : index
    %c0_19 = arith.constant 0 : index
    %23 = vector.load %arg7[%c0_18, %c0_19] : memref<1x128xf32, #tpu.memory_space<vmem>>, vector<1x128xf32>
    %cst_20 = arith.constant dense<0.000000e+00> : vector<32x128xf32>
    %24 = tpu.matmul %0, %21, %cst_20 {dimension_numbers = #tpu.dot_dimension_numbers<[1], [0], [0], [1], [0, 0, 1, 1], [], []>} : vector<32x32xbf16>, vector<32x128xbf16>, vector<32x128xf32> -> vector<32x128xf32>
    %25 = arith.truncf %24 : vector<32x128xf32> to vector<32x128xbf16>
    %cst_21 = arith.constant dense<0.000000e+00> : vector<32x128xf32>
    %26 = tpu.matmul %25, %22, %cst_21 {dimension_numbers = #tpu.dot_dimension_numbers<[1], [0], [0], [1], [0, 0, 1, 1], [], []>} : vector<32x128xbf16>, vector<128x128xbf16>, vector<32x128xf32> -> vector<32x128xf32>
    %27 = vector.broadcast %23 : vector<1x128xf32> to vector<32x128xf32>
    %28 = arith.addf %26, %27 : vector<32x128xf32>
    %cst_22 = arith.constant 0.000000e+00 : f32
    %29 = vector.broadcast %cst_22 : f32 to vector<32x128xf32>
    %30 = arith.maximumf %28, %29 : vector<32x128xf32>
    %c0_23 = arith.constant 0 : index
    %c0_24 = arith.constant 0 : index
    %31 = vector.load %arg8[%c0_23, %c0_24] : memref<32x128xf32, #tpu.memory_space<vmem>>, vector<32x128xf32>
    tpu.vector_store %arg8[%c0_23, %c0_24], %30 {strides = array<i32>} : memref<32x128xf32, #tpu.memory_space<vmem>>, vector<32x128xf32>,
    return
  }
}

</mosaic_0001>

<bundles_post_ra>
// kernel: gcn_forward.1
= control target key start
LH: loop header
LB: loop body
LE: loop exit
PB: predicated region body
PF: predicated region fallthrough
CT: control target
= control target key end

     0   :  { %vm77_vm0 = vcmask 261120   ;;  %s961_s1 = inlined_call_operand.vmem [shape: bf16[32,128], index: 1, kind: input, shape index: {}]   ;;  %s962_s0 = inlined_call_operand.vmem [shape: bf16[32,32], index: 0, kind: input, shape index: {}]   ;;  %s963_s2 = inlined_call_operand.vmem [shape: bf16[128,128], index: 2, kind: input, shape index: {}]   ;;  %s964_s4 = inlined_call_operand.vmem [shape: bf16[128,128], index: 4, kind: input, shape index: {}]   ;;  %s965_s3 = inlined_call_operand.vmem [shape: f32[1,128], index: 3, kind: input, shape index: {}]   ;;  %s966_s6 = inlined_call_operand.vmem [shape: bf16[128,128], index: 6, kind: input, shape index: {}]   ;;  %s967_s5 = inlined_call_operand.vmem [shape: f32[1,128], index: 5, kind: input, shape index: {}]   ;;  %s968_s7 = inlined_call_operand.vmem [shape: f32[1,128], index: 7, kind: input, shape index: {}]   ;;  %s969_s8 = inlined_call_operand.vmem [shape: f32[32,128], index: 8, kind: output, shape index: {}]  }
   0x1   :  { %v767_v0 = vld [vmem:[%s961_s1 + $0x8] sm:$0xff]   ;;  %v768_v1 = vld [vmem:[%s961_s1] sm:$0xff]   ;;  %v771_v3 = vld [vmem:[%s963_s2 + $0x38] sm:$0xff]  }
   0x2   :  { %683 = vmatprep.subr.bf16.mxu0 %v767_v0  ;;  %v849_v2 = vld [vmem:[%s962_s0] sm:$0xff]   ;;  %v772_v4 = vld [vmem:[%s963_s2 + $0x30] sm:$0xff]   ;;  %v862_v5 = vld [vmem:[%s962_s0 + $0x8] sm:$0xff]   ;;  %691 = vmatprep.subr.bf16.mxu1 %v771_v3 }
   0x3   :  { %684 = vmatpush3.bf16.msra.mxu0 %v767_v0  ;;  %687 = vmatprep.mubr.msk.bf16.mxu0 %vm77_vm0, %v849_v2  ;;  %v773_v6 = vld [vmem:[%s963_s2 + $0x28] sm:$0xff]   ;;  %v774_v7 = vld [vmem:[%s963_s2 + $0x20] sm:$0xff]   ;;  %v775_v8 = vld [vmem:[%s963_s2 + $0x18] sm:$0xff]  }
   0x4   :  { %685 = vmatprep.subr.bf16.mxu0 %v768_v1  ;;  %692 = vmatpush3.bf16.msra.mxu1 %v771_v3  ;;  %v776_v9 = vld [vmem:[%s963_s2 + $0x10] sm:$0xff]   ;;  %v777_v10 = vld [vmem:[%s963_s2 + $0x8] sm:$0xff]   ;;  %v778_v11 = vld [vmem:[%s963_s2] sm:$0xff]  }
   0x5   :  { %693 = vmatprep.subr.bf16.mxu1 %v772_v4  ;;  %v610_v19 = vld [vmem:[%s965_s3] ss:$0 sm:$0xff]  ;;  %v779_v33 = vld [vmem:[%s964_s4 + $0x38] sm:$0xff]   ;;  %v780_v34 = vld [vmem:[%s964_s4 + $0x30] sm:$0xff]  }
   0x6   :  { %v781_v35 = vld [vmem:[%s964_s4 + $0x28] sm:$0xff]   ;;  %v782_v36 = vld [vmem:[%s964_s4 + $0x20] sm:$0xff]   ;;  %v783_v37 = vld [vmem:[%s964_s4 + $0x18] sm:$0xff]  }
   0x7   :  { %686 = vmatpush3.bf16.msra.mxu0 %v768_v1  ;;  %v784_v38 = vld [vmem:[%s964_s4 + $0x10] sm:$0xff]   ;;  %v785_v39 = vld [vmem:[%s964_s4 + $0x8] sm:$0xff]   ;;  %v786_v40 = vld [vmem:[%s964_s4] sm:$0xff]  }
   0x8   :  { %694 = vmatpush3.bf16.msra.mxu1 %v772_v4  ;;  %v787_v47 = vld [vmem:[%s966_s6 + $0x38] sm:$0xff]   ;;  %v788_v48 = vld [vmem:[%s966_s6 + $0x30] sm:$0xff]   ;;  %v789_v49 = vld [vmem:[%s966_s6 + $0x28] sm:$0xff]  }
   0x9   :  { %695 = vmatprep.subr.bf16.mxu1 %v773_v6  ;;  %v790_v50 = vld [vmem:[%s966_s6 + $0x20] sm:$0xff]   ;;  %v791_v51 = vld [vmem:[%s966_s6 + $0x18] sm:$0xff]   ;;  %v792_v52 = vld [vmem:[%s966_s6 + $0x10] sm:$0xff]  }
   0xa   :  { %688 = vmatmul.mubr.msk.bf16.vlgmr.msra.gmra.mxu0 %vm77_vm0, %v862_v5  ;;  %v621_v54 = vld [vmem:[%s967_s5] ss:$0 sm:$0xff]  ;;  %v793_v4 = vld [vmem:[%s966_s6 + $0x8] sm:$0xff]  }
   0xb   :  { %715 = vmatprep.mubr.msk.bf16.mxu0 %vm77_vm0, %v849_v2 }
   0xc   :  { %696 = vmatpush3.bf16.msra.mxu1 %v773_v6  ;;  %v794_v6 = vld [vmem:[%s966_s6] sm:$0xff]  }
   0xd   :  { %697 = vmatprep.subr.bf16.mxu1 %v774_v7 }
  0x10   :  { %698 = vmatpush3.bf16.msra.mxu1 %v774_v7 }
  0x11   :  { %699 = vmatprep.subr.bf16.mxu1 %v775_v8 }
  0x14   :  { %700 = vmatpush3.bf16.msra.mxu1 %v775_v8 }
  0x15   :  { %701 = vmatprep.subr.bf16.mxu1 %v776_v9 }
  0x18   :  { %702 = vmatpush3.bf16.msra.mxu1 %v776_v9 }
  0x19   :  { %703 = vmatprep.subr.bf16.mxu1 %v777_v10 }
  0x1c   :  { %704 = vmatpush3.bf16.msra.mxu1 %v777_v10 }
  0x1d   :  { %705 = vmatprep.subr.bf16.mxu1 %v778_v11 }
  0x20   :  { %706 = vmatpush3.bf16.msra.mxu1 %v778_v11 }
  0x21   :  { %747 = vmatprep.subr.bf16.mxu1 %v787_v47 }
  0xca   :  { %v689_v12 = vpop.f32.mrf.mxu0 }
  0xcc   :  { %v118_v13 = vpop.f32.mrf.mxu0 }
  0xce   :  { %v690_v14 = vpop.f32.mrf.mxu0 }
  0xcf   :  { %v134_v17 = vpack.c.bf16 %v690_v14, %v689_v12 }
  0xd0   :  { %v121_v15 = vpop.f32.mrf.mxu0 }
  0xd1   :  { %v133_v16 = vpack.c.bf16 %v121_v15, %v118_v13 }
  0xd3   :  { %707 = vmatprep.mubr.bf16.mxu1 %v133_v16 }
  0xd4   :  { %708 = vmatmul.mubr.bf16.vlgmr.msra.gmra.mxu1 %v134_v17 }
  0xd5   :  { %748 = vmatpush3.bf16.msra.mxu1 %v787_v47 }
  0xd6   :  { %749 = vmatprep.subr.bf16.mxu1 %v788_v48 }
  0xd9   :  { %750 = vmatpush3.bf16.msra.mxu1 %v788_v48 }
  0xda   :  { %751 = vmatprep.subr.bf16.mxu1 %v789_v49 }
  0xdd   :  { %752 = vmatpush3.bf16.msra.mxu1 %v789_v49 }
  0xde   :  { %753 = vmatprep.subr.bf16.mxu1 %v790_v50 }
  0xe1   :  { %754 = vmatpush3.bf16.msra.mxu1 %v790_v50 }
  0xe2   :  { %755 = vmatprep.subr.bf16.mxu1 %v791_v51 }
  0xe5   :  { %756 = vmatpush3.bf16.msra.mxu1 %v791_v51 }
  0xe6   :  { %757 = vmatprep.subr.bf16.mxu1 %v792_v52 }
  0xe9   :  { %758 = vmatpush3.bf16.msra.mxu1 %v792_v52 }
  0xea   :  { %759 = vmatprep.subr.bf16.mxu1 %v793_v4 }
  0xed   :  { %760 = vmatpush3.bf16.msra.mxu1 %v793_v4 }
  0xee   :  { %761 = vmatprep.subr.bf16.mxu1 %v794_v6 }
  0xf1   :  { %762 = vmatpush3.bf16.msra.mxu1 %v794_v6 }
 0x194   :  { %v709_v18 = vpop.f32.mrf.mxu1 }
 0x195   :  { %v232_v21 = vadd.f32 %v709_v18, %v610_v19 }
 0x196   :  { %v223_v20 = vpop.f32.mrf.mxu1 }
 0x197   :  { %v224_v23 = vadd.f32 %v610_v19, %v223_v20  ;;  %v240_v26 = vmax.f32 %v232_v21, 0.0 }
 0x198   :  { %v710_v22 = vpop.f32.mrf.mxu1 }
 0x199   :  { %v235_v24 = vadd.f32 %v710_v22, %v610_v19  ;;  %v238_v29 = vmax.f32 %v224_v23, 0.0 }
 0x19a   :  { %v226_v25 = vpop.f32.mrf.mxu1 }
 0x19b   :  { %v241_v27 = vmax.f32 %v235_v24, 0.0  ;;  %v227_v28 = vadd.f32 %v610_v19, %v226_v25 }
 0x19d   :  { %v243_v30 = vpack.c.bf16 %v241_v27, %v240_v26  ;;  %v239_v31 = vmax.f32 %v227_v28, 0.0 }
 0x19f   :  { %v242_v32 = vpack.c.bf16 %v239_v31, %v238_v29  ;;  %711 = vmatprep.subr.bf16.mxu0 %v243_v30 }
 0x1a0   :  { %712 = vmatpush3.bf16.msra.mxu0 %v243_v30 }
 0x1a1   :  { %713 = vmatprep.subr.bf16.mxu0 %v242_v32 }
 0x1a4   :  { %714 = vmatpush3.bf16.msra.mxu0 %v242_v32 }
 0x1a5   :  { %719 = vmatprep.subr.bf16.mxu0 %v779_v33 }
 0x1a7   :  { %716 = vmatmul.mubr.msk.bf16.vlgmr.msra.gmra.mxu0 %vm77_vm0, %v862_v5 }
 0x1a8   :  { %720 = vmatpush3.bf16.msra.mxu0 %v779_v33 }
 0x1a9   :  { %721 = vmatprep.subr.bf16.mxu0 %v780_v34 }
 0x1ac   :  { %722 = vmatpush3.bf16.msra.mxu0 %v780_v34 }
 0x1ad   :  { %723 = vmatprep.subr.bf16.mxu0 %v781_v35 }
 0x1b0   :  { %724 = vmatpush3.bf16.msra.mxu0 %v781_v35 }
 0x1b1   :  { %725 = vmatprep.subr.bf16.mxu0 %v782_v36 }
 0x1b4   :  { %726 = vmatpush3.bf16.msra.mxu0 %v782_v36 }
 0x1b5   :  { %727 = vmatprep.subr.bf16.mxu0 %v783_v37 }
 0x1b8   :  { %728 = vmatpush3.bf16.msra.mxu0 %v783_v37 }
 0x1b9   :  { %729 = vmatprep.subr.bf16.mxu0 %v784_v38 }
 0x1bc   :  { %730 = vmatpush3.bf16.msra.mxu0 %v784_v38 }
 0x1bd   :  { %731 = vmatprep.subr.bf16.mxu0 %v785_v39 }
 0x1c0   :  { %732 = vmatpush3.bf16.msra.mxu0 %v785_v39 }
 0x1c1   :  { %733 = vmatprep.subr.bf16.mxu0 %v786_v40 }
 0x1c4   :  { %734 = vmatpush3.bf16.msra.mxu0 %v786_v40 }
 0x267   :  { %v717_v41 = vpop.f32.mrf.mxu0 }
 0x269   :  { %v295_v42 = vpop.f32.mrf.mxu0 }
 0x26b   :  { %v718_v43 = vpop.f32.mrf.mxu0 }
 0x26c   :  { %v311_v46 = vpack.c.bf16 %v718_v43, %v717_v41 }
 0x26d   :  { %v298_v44 = vpop.f32.mrf.mxu0 }
 0x26e   :  { %v310_v45 = vpack.c.bf16 %v298_v44, %v295_v42 }
 0x270   :  { %735 = vmatprep.mubr.bf16.mxu0 %v310_v45 }
 0x271   :  { %736 = vmatmul.mubr.bf16.vlgmr.msra.gmra.mxu0 %v311_v46 }
 0x272   :  { %743 = vmatprep.mubr.msk.bf16.mxu0 %vm77_vm0, %v849_v2 }
 0x331   :  { %v737_v53 = vpop.f32.mrf.mxu0 }
 0x332   :  { %v409_v56 = vadd.f32 %v737_v53, %v621_v54 }
 0x333   :  { %v400_v55 = vpop.f32.mrf.mxu0 }
 0x334   :  { %v401_v58 = vadd.f32 %v621_v54, %v400_v55  ;;  %v417_v61 = vmax.f32 %v409_v56, 0.0 }
 0x335   :  { %v738_v57 = vpop.f32.mrf.mxu0 }
 0x336   :  { %v412_v59 = vadd.f32 %v738_v57, %v621_v54  ;;  %v415_v0 = vmax.f32 %v401_v58, 0.0 }
 0x337   :  { %v403_v60 = vpop.f32.mrf.mxu0 }
 0x338   :  { %v418_v62 = vmax.f32 %v412_v59, 0.0  ;;  %v404_v63 = vadd.f32 %v621_v54, %v403_v60 }
 0x33a   :  { %v420_v1 = vpack.c.bf16 %v418_v62, %v417_v61  ;;  %v416_v2 = vmax.f32 %v404_v63, 0.0 }
 0x33c   :  { %v419_v3 = vpack.c.bf16 %v416_v2, %v415_v0  ;;  %739 = vmatprep.subr.bf16.mxu0 %v420_v1 }
 0x33d   :  { %740 = vmatpush3.bf16.msra.mxu0 %v420_v1 }
 0x33e   :  { %741 = vmatprep.subr.bf16.mxu0 %v419_v3 }
 0x341   :  { %742 = vmatpush3.bf16.msra.mxu0 %v419_v3 }
 0x344   :  { %744 = vmatmul.mubr.msk.bf16.vlgmr.msra.gmra.mxu0 %vm77_vm0, %v862_v5  ;;  %v632_v5 = vld [vmem:[%s968_s7] ss:$0 sm:$0xff] }
 0x404   :  { %v745_v7 = vpop.f32.mrf.mxu0 }
 0x406   :  { %v472_v8 = vpop.f32.mrf.mxu0 }
 0x408   :  { %v746_v9 = vpop.f32.mrf.mxu0 }
 0x409   :  { %v488_v12 = vpack.c.bf16 %v746_v9, %v745_v7 }
 0x40a   :  { %v475_v10 = vpop.f32.mrf.mxu0 }
 0x40b   :  { %v487_v11 = vpack.c.bf16 %v475_v10, %v472_v8 }
 0x40d   :  { %763 = vmatprep.mubr.bf16.mxu1 %v487_v11 }
 0x40e   :  { %764 = vmatmul.mubr.bf16.vlgmr.msra.gmra.mxu1 %v488_v12 }
 0x4ce   :  { %v765_v13 = vpop.f32.mrf.mxu1 }
 0x4cf   :  { %v586_v14 = vadd.f32 %v765_v13, %v632_v5 }
 0x4d0   :  { %v577_v15 = vpop.f32.mrf.mxu1 }
 0x4d1   :  { %v594_v16 = vmax.f32 %v586_v14, 0.0  ;;  %v578_v17 = vadd.f32 %v632_v5, %v577_v15 }
 0x4d2   :  { %v766_v18 = vpop.f32.mrf.mxu1 }
 0x4d3   :  { %598 = vst [vmem:[%s969_s8 + $0x10] sm:$0xff] %v594_v16  ;;  %v592_v19 = vmax.f32 %v578_v17, 0.0  ;;  %v589_v20 = vadd.f32 %v766_v18, %v632_v5 }
 0x4d4   :  { %v580_v21 = vpop.f32.mrf.mxu1 }
 0x4d5   :  { %596 = vst [vmem:[%s969_s8] sm:$0xff] %v592_v19  ;;  %v595_v22 = vmax.f32 %v589_v20, 0.0  ;;  %v581_v23 = vadd.f32 %v632_v5, %v580_v21 }
 0x4d7   :  { %599 = vst [vmem:[%s969_s8 + $0x18] sm:$0xff] %v595_v22  ;;  %v593_v24 = vmax.f32 %v581_v23, 0.0 }
 0x4d9   :  { %597 = vst [vmem:[%s969_s8 + $0x8] sm:$0xff] %v593_v24 }

</bundles_post_ra>
